<compile_context>
chip_gen: v5e
topology: v5e:2x2
jax: 0.10.0
libtpu: 0.0.40
codegen_flags: <defaults>
</compile_context>

<pallas_src>
import functools
import math

import jax
import jax.numpy as jnp
from jax.experimental import pallas as pl
from jax.experimental.pallas import tpu as pltpu


def _xlogx(v: float) -> float:
    """x*log(x) with the 0*log(0) := 0 convention (matches KLDivLoss y<=0 handling)."""
    return float(v) * math.log(float(v)) if v > 0.0 else 0.0


def _label_smoothing_kernel(x_ref, tgt_ref, rowadd_ref, out_ref, *,
                            n_rows, tile_n, padding_idx, smooth_val):
    """One row-tile of label-smoothed KLDivLoss(reduction='sum').

    Per valid row r (target != padding_idx):
        loss_r = row_entropy + (smooth_val - confidence) * x[r, tgt[r]]      (row_add, precomputed)
                 + smooth_val * (x[r, padding_idx] - sum_j x[r, j])          (cross, streamed here)
    Invalid rows (target == padding_idx) and the out-of-range tail of the last
    clipped tile contribute exactly 0 (selected away, never multiplied).
    """
    i = pl.program_id(0)

    x = x_ref[...].astype(jnp.float32)                      # (tile_n, V); bf16 cast per-tile
    rowsum = jnp.sum(x, axis=-1, keepdims=True)             # (tile_n, 1)  XLU row reduction
    x_pad = x[:, padding_idx:padding_idx + 1]                # static column slice (tile_n, 1)
    cross = jnp.float32(smooth_val) * (x_pad - rowsum)       # (tile_n, 1)

    # Row validity: real row (not the clipped tail of the last block) AND not a pad token.
    row_ids = i * tile_n + jax.lax.broadcasted_iota(jnp.int32, (x.shape[0], 1), 0)
    valid = (tgt_ref[...] != padding_idx) & (row_ids < n_rows)

    per_row = jnp.where(valid, rowadd_ref[...] + cross, jnp.float32(0.0))
    out_ref[...] = jnp.sum(per_row).reshape(1, 1, 1)         # per-tile partial sum


def label_smoothing_loss(x, target, *, size, padding_idx, smoothing,
                         tile_n=None, tile_budget_bytes=8 * 1024 * 1024):
    """Pallas equivalent of LabelSmoothing(size, padding_idx, smoothing)(x, target).

    x: (N, V) log-probabilities (float32 or bfloat16), V == size.
    target: (N,) integer class indices.
    Returns the scalar KLDivLoss(reduction='sum') against the smoothed distribution.
    """
    N, V = x.shape
    assert V == size, "x.size(1) must equal self.size"

    confidence = 1.0 - smoothing
    smooth_val = smoothing / (size - 2)
    # Compile-time per-valid-row entropy term sum(y * log y).
    row_entropy = (size - 2) * _xlogx(smooth_val) + _xlogx(confidence)

    tgt2d = target.astype(jnp.int32).reshape(N, 1)
    # Tiny N-element gather done once in the wrapper (keeps the kernel a pure row-sum).
    x_at_tgt = jnp.take_along_axis(x, tgt2d, axis=1).astype(jnp.float32)   # (N, 1)
    row_add = (jnp.float32(row_entropy)
               + jnp.float32(smooth_val - confidence) * x_at_tgt)          # (N, 1) f32

    # ---- row-tile selection: largest tile within a per-buffer VMEM budget ----
    itemsize = jnp.dtype(x.dtype).itemsize
    bytes_per_row = V * itemsize
    if tile_n is None:
        tile_n = max(1, int(tile_budget_bytes // max(1, bytes_per_row)))
    align = 16 if x.dtype == jnp.bfloat16 else 8   # bf16 packs two rows per sublane
    if tile_n < N:
        tile_n = max(align, (tile_n // align) * align)
    if tile_n >= N:
        tile_n = N                                  # single block with full rows is legal
    num_tiles = -(-N // tile_n)

    kernel = functools.partial(
        _label_smoothing_kernel,
        n_rows=N, tile_n=tile_n, padding_idx=padding_idx, smooth_val=smooth_val,
    )

    partials = pl.pallas_call(
        kernel,
        out_shape=jax.ShapeDtypeStruct((num_tiles, 1, 1), jnp.float32),
        grid=(num_tiles,),
        in_specs=[
            pl.BlockSpec((tile_n, V), lambda i: (i, 0)),   # x row tile (no wrapper cast/pad)
            pl.BlockSpec((tile_n, 1), lambda i: (i, 0)),   # per-row target indices
            pl.BlockSpec((tile_n, 1), lambda i: (i, 0)),   # per-row precomputed add term
        ],
        out_specs=pl.BlockSpec((1, 1, 1), lambda i: (i, 0, 0)),  # per-tile partial sum
        compiler_params=pltpu.CompilerParams(
            dimension_semantics=("parallel",),             # independent tiles -> v7x 2-TC shard
            vmem_limit_bytes=48 * 1024 * 1024,             # fits v7x 64 MiB w/ headroom
        ),
        cost_estimate=pl.CostEstimate(
            flops=3 * N * V,
            transcendentals=0,
            bytes_accessed=N * V * itemsize + 8 * N + 4 * num_tiles,
        ),
    )(x, tgt2d, row_add)
    return jnp.sum(partials)


def _reference_loss(x, target, *, size, padding_idx, smoothing):
    """Pure-JAX reference mirroring the PyTorch forward (for sanity check)."""
    N, V = x.shape
    x = x.astype(jnp.float32)
    col = jnp.arange(V)[None, :]
    tgt = target.astype(jnp.int32)[:, None]
    true_dist = jnp.full((N, V), smoothing / (size - 2), jnp.float32)
    true_dist = jnp.where(col == tgt, 1.0 - smoothing, true_dist)
    true_dist = jnp.where(col == padding_idx, 0.0, true_dist)
    true_dist = jnp.where(tgt == padding_idx, 0.0, true_dist)
    kl = jnp.where(true_dist > 0, true_dist * (jnp.log(true_dist) - x), 0.0)
    return jnp.sum(kl)


if __name__ == "__main__":
    key = jax.random.PRNGKey(0)

    # --- Test 1: small f32 case (N=8 tokens, vocab=32), single tile ---
    SIZE, PADDING_IDX, SMOOTHING, N = 32, 0, 0.1, 8
    k1, k2, k3, k4 = jax.random.split(key, 4)

    logits = jax.random.normal(k1, (N, SIZE), dtype=jnp.float32)
    x = jax.nn.log_softmax(logits, axis=-1)
    target = jax.random.randint(k2, (N,), 0, SIZE, dtype=jnp.int32)
    target = target.at[3].set(PADDING_IDX)          # exercise the padding-row path

    loss = jax.block_until_ready(label_smoothing_loss(
        x, target, size=SIZE, padding_idx=PADDING_IDX, smoothing=SMOOTHING))
    ref = _reference_loss(
        x, target, size=SIZE, padding_idx=PADDING_IDX, smoothing=SMOOTHING)
    assert jnp.allclose(loss, ref, rtol=1e-4, atol=1e-3), (loss, ref)

    # --- Test 2: bf16 input, multi-tile grid (tile_n=16), ragged N -> in-kernel tail mask ---
    SIZE2, N2 = 256, 20
    logits2 = jax.random.normal(k3, (N2, SIZE2), dtype=jnp.float32)
    x2_bf16 = jax.nn.log_softmax(logits2, axis=-1).astype(jnp.bfloat16)
    target2 = jax.random.randint(k4, (N2,), 0, SIZE2, dtype=jnp.int32)
    target2 = target2.at[0].set(PADDING_IDX)

    loss2 = jax.block_until_ready(label_smoothing_loss(
        x2_bf16, target2, size=SIZE2, padding_idx=PADDING_IDX,
        smoothing=SMOOTHING, tile_n=16))
    ref2 = _reference_loss(
        x2_bf16, target2, size=SIZE2, padding_idx=PADDING_IDX, smoothing=SMOOTHING)
    assert jnp.allclose(loss2, ref2, rtol=1e-3, atol=1e-2), (loss2, ref2)

    print("KERNEL_OK")
</pallas_src>

<mosaic_0001>
module attributes {stable_mosaic.version = 11 : i64} {
  func.func @_label_smoothing_kernel(%arg0: i32, %arg1: memref<8x32xf32, #tpu.memory_space<vmem>>, %arg2: memref<8x1xi32, #tpu.memory_space<vmem>>, %arg3: memref<8x1xf32, #tpu.memory_space<vmem>>, %arg4: memref<1x1x1xf32, #tpu.memory_space<vmem>>) attributes {dimension_semantics = [#tpu.dimension_semantics<parallel>], iteration_bounds = array<i64: 1>, scalar_prefetch = 0 : i64, scratch_operands = 0 : i64, tpu.core_type = #tpu.core_type<tc>, window_params = [{transform_indices = @transform_0, window_bounds = array<i64: 8, 32>}, {transform_indices = @transform_1, window_bounds = array<i64: 8, 1>}, {transform_indices = @transform_2, window_bounds = array<i64: 8, 1>}, {transform_indices = @transform_3, window_bounds = array<i64: 1, 1, 1>}]} {
    %c0 = arith.constant 0 : index
    %c0_0 = arith.constant 0 : index
    %0 = vector.load %arg1[%c0, %c0_0] : memref<8x32xf32, #tpu.memory_space<vmem>>, vector<8x32xf32>
    %cst = arith.constant dense<0.000000e+00> : vector<8xf32>
    %1 = vector.multi_reduction <add>, %0, %cst [1] : vector<8x32xf32> to vector<8xf32>
    %2 = vector.shape_cast %1 : vector<8xf32> to vector<8x1xf32>
    %3 = vector.extract_strided_slice %0 {offsets = [0, 0], sizes = [8, 1], strides = [1, 1]} : vector<8x32xf32> to vector<8x1xf32>
    %4 = arith.subf %3, %2 : vector<8x1xf32>
    %cst_1 = arith.constant 0.00333333341 : f32
    %5 = vector.broadcast %cst_1 : f32 to vector<8x1xf32>
    %6 = arith.mulf %5, %4 : vector<8x1xf32>
    %c8_i32 = arith.constant 8 : i32
    %7 = arith.muli %arg0, %c8_i32 : i32
    %8 = tpu.iota {dimensions = array<i32: 0>} : vector<8x1xi32>
    %9 = vector.broadcast %7 : i32 to vector<8x1xi32>
    %10 = arith.addi %9, %8 : vector<8x1xi32>
    %c0_2 = arith.constant 0 : index
    %c0_3 = arith.constant 0 : index
    %11 = vector.load %arg2[%c0_2, %c0_3] : memref<8x1xi32, #tpu.memory_space<vmem>>, vector<8x1xi32>
    %c0_i32 = arith.constant 0 : i32
    %12 = vector.broadcast %c0_i32 : i32 to vector<8x1xi32>
    %13 = arith.cmpi ne, %11, %12 : vector<8x1xi32>
    %c8_i32_4 = arith.constant 8 : i32
    %14 = vector.broadcast %c8_i32_4 : i32 to vector<8x1xi32>
    %15 = arith.cmpi slt, %10, %14 : vector<8x1xi32>
    %16 = arith.andi %13, %15 : vector<8x1xi1>
    %c0_5 = arith.constant 0 : index
    %c0_6 = arith.constant 0 : index
    %17 = vector.load %arg3[%c0_5, %c0_6] : memref<8x1xf32, #tpu.memory_space<vmem>>, vector<8x1xf32>
    %18 = arith.addf %17, %6 : vector<8x1xf32>
    %cst_7 = arith.constant 0.000000e+00 : f32
    %19 = vector.broadcast %cst_7 : f32 to vector<8x1xf32>
    %20 = arith.select %16, %18, %19 : vector<8x1xi1>, vector<8x1xf32>
    %21 = vector.shape_cast %20 : vector<8x1xf32> to vector<1x8x1xf32>
    %cst_8 = arith.constant dense<0.000000e+00> : vector<1xf32>
    %22 = vector.multi_reduction <add>, %21, %cst_8 [1, 2] : vector<1x8x1xf32> to vector<1xf32>
    %23 = vector.shape_cast %22 : vector<1xf32> to vector<1x1x1xf32>
    %24 = vector.extract %23[0, 0, 0] : f32 from vector<1x1x1xf32>
    %25 = vector.broadcast %24 : f32 to vector<1x1x1xf32>
    %c0_9 = arith.constant 0 : index
    %c0_10 = arith.constant 0 : index
    %c0_11 = arith.constant 0 : index
    %26 = vector.load %arg4[%c0_9, %c0_10, %c0_11] : memref<1x1x1xf32, #tpu.memory_space<vmem>>, vector<1x1x1xf32>
    tpu.vector_store %arg4[%c0_9, %c0_10, %c0_11], %25 {strides = array<i32>} : memref<1x1x1xf32, #tpu.memory_space<vmem>>, vector<1x1x1xf32>,
    return
  }
  func.func @transform_0(%arg0: i32) -> (i32, i32) {
    %c0_i32 = arith.constant 0 : i32
    %c0_i32_0 = arith.constant 0 : i32
    return %arg0, %c0_i32 : i32, i32
  }
  func.func @transform_1(%arg0: i32) -> (i32, i32) {
    %c0_i32 = arith.constant 0 : i32
    %c0_i32_0 = arith.constant 0 : i32
    return %arg0, %c0_i32 : i32, i32
  }
  func.func @transform_2(%arg0: i32) -> (i32, i32) {
    %c0_i32 = arith.constant 0 : i32
    %c0_i32_0 = arith.constant 0 : i32
    return %arg0, %c0_i32 : i32, i32
  }
  func.func @transform_3(%arg0: i32) -> (i32, i32, i32) {
    %c0_i32 = arith.constant 0 : i32
    %c0_i32_0 = arith.constant 0 : i32
    %c0_i32_1 = arith.constant 0 : i32
    return %arg0, %c0_i32, %c0_i32_0 : i32, i32, i32
  }
}

</mosaic_0001>

<bundles_post_ra>
// kernel: tpu_custom_call.1
= control target key start
LH: loop header
LB: loop body
LE: loop exit
PB: predicated region body
PF: predicated region fallthrough
CT: control target
= control target key end

     0   :  { %vm16_vm0 = vcmask 261120   ;;  %s126_s0 = inlined_call_operand.vmem [shape: f32[8,32], index: 0, kind: input, shape index: {}]   ;;  %s127_s1 = inlined_call_operand.vmem [shape: s32[8,1], index: 1, kind: input, shape index: {}]   ;;  %s128_s2 = inlined_call_operand.vmem [shape: f32[8,1], index: 2, kind: input, shape index: {}]   ;;  %s129_s3 = inlined_call_operand.hbm [shape: f32[1,1,1], index: 3, kind: output, shape index: {}]  }
   0x1   :  { %v15_v0 = vld [vmem:[%s126_s0] sm:$0xff] }
   0x2   :  { %8 = vsyncpa [#allocation3], 0  ;;  %v17_v1 = vsel %vm16_vm0, %v15_v0, 0.0  ;;  %v27_v4 = vld [vmem:[%s127_s1] sm:$0xff]  ;;  %vm34_vm2 = vcmask 7168   ;;  %s93_s0 = smov [#allocation2]  }
   0x3   :  { %18 = vadd.xlane.f32.xlu0 %v17_v1  ;;  %v31_v5 = vld [vmem:[%s128_s2] sm:$0xff]  ;;  %vm28_vm1 = vcmp.ne.s32.totalorder %v27_v4, 0  ;;  %s53_s1 = sshll.u32 %s93_s0, 4  ;;  %s55_s2 = sshll.u32 %s129_s3, 4  ;;  %vm46_vm3 = vcmask 0   ;;  %s54_s1 = int_to_ptr.vmem [resolvable:$true] %s53_s1  ;;  %s56_s2 = int_to_ptr.hbm [resolvable:$true] %s55_s2 }
  0x76   :  { %v19_v2 = vpop.xlane.xlu0 %18 }
  0x77   :  { %v20_v3 = vsub.f32 %v15_v0, %v19_v2 }
  0x79   :  { %v21_v6 = vmul.f32 0.0033333334, %v20_v3 }
  0x7b   :  { %v32_v7 = vadd.f32 %v31_v5, %v21_v6 }
  0x7d   :  { %v33_v8 = vsel %vm28_vm1, %v32_v7, 0.0 }
  0x7e   :  { %v35_v9 = vsel %vm34_vm2, %v33_v8, 0.0 }
  0x7f   :  { %36 = vadd.xlane.f32.xlu0 %v35_v9 }
  0xf2   :  { %v37_v10 = vpop.xlane.xlu0 %36 }
  0xf3   :  { %v38_v11 = vrot.slane %v37_v10, 4 }
  0xf5   :  { %v39_v12 = vadd.f32 %v38_v11, %v37_v10 }
  0xf7   :  { %v40_v13 = vrot.slane %v39_v12, 2 }
  0xf9   :  { %v41_v14 = vadd.f32 %v40_v13, %v39_v12 }
  0xfb   :  { %v42_v15 = vrot.slane %v41_v14, 1 }
  0xfd   :  { %v43_v16 = vadd.f32 %v42_v15, %v41_v14 }
  0xff   :  { %64 = vpush %v43_v16 }
 0x130   :  { %s65_s20 = spop %64 }
 0x131   :  { %v45_v17 = vstv %s65_s20 }
 0x132   :  { %47 = vst.msk [vmem:[#allocation2] sm:$0x1] %vm46_vm3, %v45_v17 }
 0x133   :  { %58 = dma.vmem_to_hbm [thread:$0]  %s54_s1, 16, %s56_s2, [#allocation3]  }
 0x134   :  { %91 = dma.done.wait [#allocation3], 16  }
 0x135   :  { %92 = vsyncadd [#allocation3], 4294967280 }
 0x136   :  { %63 = vsyncpa [#allocation3], 1 }

</bundles_post_ra>
